<compile_context>
chip_gen: v7x
topology: tpu7x:2x2x1
jax: 0.10.0
libtpu: 0.0.40
codegen_flags: <defaults>
</compile_context>

<pallas_src>
import functools

import jax
import jax.numpy as jnp
from jax.experimental import pallas as pl
from jax.experimental.pallas import tpu as pltpu


def _scse_kernel(x_ref, ws_ref, cgate_ref, o_ref):
    """x_ref: (C, T) spatial tile of one image.
    ws_ref:    (C, 1) weight of the 1x1 spatial conv (sSE branch).
    cgate_ref: (C, 1) precomputed per-channel cSE gate for this image.
    o_ref:     (C, T) = x * (sigmoid(w . x) + cgate).
    """
    x = x_ref[...]
    xf = x.astype(jnp.float32)
    w = ws_ref[...].astype(jnp.float32)                   # (C, 1)
    # 1x1 conv over channels == per-pixel reduction along sublanes (VPU/XLU, no MXU).
    logits = jnp.sum(xf * w, axis=0, keepdims=True)       # (1, T), f32 accumulate
    s = jax.nn.sigmoid(logits)                            # (1, T) spatial gate (EUP)
    gate = s + cgate_ref[...].astype(jnp.float32)         # (C, T) = sSE + cSE gates
    # Final gating multiply in the input dtype (bf16-native on v6e/v7x; Mosaic
    # upcasts automatically on v5e). Logits/sigmoid stay in f32.
    o_ref[...] = (x * gate.astype(x.dtype)).astype(o_ref.dtype)


def _pick_spatial_tile(hw, c, itemsize, tile_budget_bytes):
    """Largest lane-dense spatial tile (multiple of 128, or the full H*W) whose
    (C, tile) buffer stays within the per-buffer VMEM byte budget."""
    max_elems = max(128, tile_budget_bytes // max(1, c * itemsize))
    if hw <= max_elems:
        return hw                          # full spatial extent: always a legal block
    return max(128, (max_elems // 128) * 128)


@functools.partial(jax.jit, static_argnames=("tile_budget_bytes",))
def scse(x, spatial_w, squeeze_w, squeeze_b, expand_w, expand_b,
         *, tile_budget_bytes=2 * 1024 * 1024):
    """SCSE forward.  x: (N, C, H, W) NCHW, as in PyTorch.
    spatial_w: (1, C, 1, 1)   Conv2d(C, 1, 1, bias=False).weight
    squeeze_w: (mid, C, 1, 1), squeeze_b: (mid,)
    expand_w:  (C, mid, 1, 1), expand_b:  (C,)
    """
    N, C, H, W = x.shape
    HW = H * W
    x3 = x.reshape(N, C, HW)                               # free reshape, no transpose

    # ---- cSE gate (tiny O(N*C) math, left to XLA): pool -> FC -> ReLU -> FC -> sigmoid
    mid = squeeze_w.shape[0]
    pooled = jnp.mean(x3, axis=-1)                                        # (N, C)
    hdn = jax.nn.relu(pooled @ squeeze_w.reshape(mid, C).T + squeeze_b)   # (N, mid)
    cgate = jax.nn.sigmoid(hdn @ expand_w.reshape(C, mid).T + expand_b)   # (N, C)
    cgate = cgate.reshape(N, C, 1).astype(jnp.float32)

    ws = spatial_w.reshape(C, 1).astype(jnp.float32)                      # (C, 1)

    # ---- fused gate application (the O(N*C*H*W) part) in Pallas
    tile = _pick_spatial_tile(HW, C, x.dtype.itemsize, tile_budget_bytes)
    grid = (N, pl.cdiv(HW, tile))                          # padded last tile if ragged

    out3 = pl.pallas_call(
        _scse_kernel,
        out_shape=jax.ShapeDtypeStruct((N, C, HW), x.dtype),
        grid_spec=pltpu.PrefetchScalarGridSpec(
            num_scalar_prefetch=0,
            grid=grid,
            in_specs=[
                # x tile: batch dim squeezed, channels on sublanes, lane-dense
                # spatial axis last (the big single lever for stores/loads).
                pl.BlockSpec((None, C, tile), lambda n, j: (n, 0, j)),
                # tiny resident conv weight (constant index_map)
                pl.BlockSpec((C, 1), lambda n, j: (0, 0)),
                # per-image channel gate
                pl.BlockSpec((None, C, 1), lambda n, j: (n, 0, 0)),
            ],
            out_specs=pl.BlockSpec((None, C, tile), lambda n, j: (n, 0, j)),
        ),
        compiler_params=pltpu.CompilerParams(
            # both grid axes are independent -> shards across v7x's 2 TensorCores
            dimension_semantics=("parallel", "parallel"),
        ),
    )(x3, ws, cgate)

    return out3.reshape(N, C, H, W)


def _reference(x, spatial_w, squeeze_w, squeeze_b, expand_w, expand_b):
    """Pure-JAX reference of the PyTorch SCSE forward."""
    N, C, H, W = x.shape
    mid = squeeze_w.shape[0]
    # sSE branch
    logits = jnp.sum(x * spatial_w.reshape(1, C, 1, 1), axis=1, keepdims=True)
    sa = x * jax.nn.sigmoid(logits)
    # cSE branch
    pooled = jnp.mean(x, axis=(2, 3))
    hdn = jax.nn.relu(pooled @ squeeze_w.reshape(mid, C).T + squeeze_b)
    cg = jax.nn.sigmoid(hdn @ expand_w.reshape(C, mid).T + expand_b)
    ca = x * cg[:, :, None, None]
    return sa + ca


if __name__ == "__main__":
    key = jax.random.PRNGKey(0)
    kx, ksp, kq, kqb, ke, keb = jax.random.split(key, 6)

    # Small shapes consistent with the module: reduction=16 requires C >= 16.
    N, C, H, W = 2, 32, 16, 16
    reduction = 16
    mid = C // reduction  # = 2

    x = jax.random.normal(kx, (N, C, H, W), dtype=jnp.float32)
    spatial_w = jax.random.normal(ksp, (1, C, 1, 1), dtype=jnp.float32) * 0.1
    squeeze_w = jax.random.normal(kq, (mid, C, 1, 1), dtype=jnp.float32) * 0.1
    squeeze_b = jax.random.normal(kqb, (mid,), dtype=jnp.float32) * 0.1
    expand_w = jax.random.normal(ke, (C, mid, 1, 1), dtype=jnp.float32) * 0.1
    expand_b = jax.random.normal(keb, (C,), dtype=jnp.float32) * 0.1

    out = scse(x, spatial_w, squeeze_w, squeeze_b, expand_w, expand_b)
    out = jax.block_until_ready(out)

    ref = _reference(x, spatial_w, squeeze_w, squeeze_b, expand_w, expand_b)
    assert out.shape == (N, C, H, W)
    assert jnp.allclose(out, ref, atol=1e-5, rtol=1e-5), "mismatch vs reference"

    print("KERNEL_OK")
</pallas_src>

<mosaic_0001>
module attributes {stable_mosaic.version = 11 : i64} {
  func.func @_scse_kernel(%arg0: i32, %arg1: i32, %arg2: memref<1x32x256xf32, #tpu.memory_space<vmem>>, %arg3: memref<32x1xf32, #tpu.memory_space<vmem>>, %arg4: memref<1x32x1xf32, #tpu.memory_space<vmem>>, %arg5: memref<1x32x256xf32, #tpu.memory_space<vmem>>) attributes {dimension_semantics = [#tpu.dimension_semantics<parallel>, #tpu.dimension_semantics<parallel>], iteration_bounds = array<i64: 2, 1>, scalar_prefetch = 0 : i64, scratch_operands = 0 : i64, tpu.core_type = #tpu.core_type<tc>, window_params = [{transform_indices = @transform_0, window_bounds = array<i64: 1, 32, 256>}, {pipeline_mode = #tpu.pipeline_mode<synchronous>, transform_indices = @transform_1, window_bounds = array<i64: 32, 1>}, {transform_indices = @transform_2, window_bounds = array<i64: 1, 32, 1>}, {transform_indices = @transform_3, window_bounds = array<i64: 1, 32, 256>}]} {
    %c0 = arith.constant 0 : index
    %c0_0 = arith.constant 0 : index
    %c0_1 = arith.constant 0 : index
    %0 = vector.load %arg2[%c0, %c0_0, %c0_1] : memref<1x32x256xf32, #tpu.memory_space<vmem>>, vector<1x32x256xf32>
    %1 = vector.shape_cast %0 : vector<1x32x256xf32> to vector<32x256xf32>
    %c0_2 = arith.constant 0 : index
    %c0_3 = arith.constant 0 : index
    %2 = vector.load %arg3[%c0_2, %c0_3] : memref<32x1xf32, #tpu.memory_space<vmem>>, vector<32x1xf32>
    %3 = vector.broadcast %2 : vector<32x1xf32> to vector<32x256xf32>
    %4 = arith.mulf %1, %3 : vector<32x256xf32>
    %cst = arith.constant dense<0.000000e+00> : vector<256xf32>
    %5 = vector.multi_reduction <add>, %4, %cst [0] : vector<32x256xf32> to vector<256xf32>
    %6 = vector.shape_cast %5 : vector<256xf32> to vector<1x256xf32>
    %7 = arith.negf %6 : vector<1x256xf32>
    %8 = math.exp %7 : vector<1x256xf32>
    %cst_4 = arith.constant 1.000000e+00 : f32
    %9 = vector.broadcast %cst_4 : f32 to vector<1x256xf32>
    %10 = arith.addf %9, %8 : vector<1x256xf32>
    %11 = arith.divf %9, %10 : vector<1x256xf32>
    %c0_5 = arith.constant 0 : index
    %c0_6 = arith.constant 0 : index
    %c0_7 = arith.constant 0 : index
    %12 = vector.load %arg4[%c0_5, %c0_6, %c0_7] : memref<1x32x1xf32, #tpu.memory_space<vmem>>, vector<1x32x1xf32>
    %13 = vector.shape_cast %12 : vector<1x32x1xf32> to vector<32x1xf32>
    %14 = vector.broadcast %11 : vector<1x256xf32> to vector<32x256xf32>
    %15 = vector.broadcast %13 : vector<32x1xf32> to vector<32x256xf32>
    %16 = arith.addf %14, %15 : vector<32x256xf32>
    %17 = arith.mulf %1, %16 : vector<32x256xf32>
    %c0_8 = arith.constant 0 : index
    %c0_9 = arith.constant 0 : index
    %c0_10 = arith.constant 0 : index
    %18 = vector.load %arg5[%c0_8, %c0_9, %c0_10] : memref<1x32x256xf32, #tpu.memory_space<vmem>>, vector<1x32x256xf32>
    %19 = vector.shape_cast %18 : vector<1x32x256xf32> to vector<32x256xf32>
    %20 = vector.shape_cast %17 : vector<32x256xf32> to vector<1x32x256xf32>
    tpu.vector_store %arg5[%c0_8, %c0_9, %c0_10], %20 {strides = array<i32>} : memref<1x32x256xf32, #tpu.memory_space<vmem>>, vector<1x32x256xf32>,
    return
  }
  func.func @transform_0(%arg0: i32, %arg1: i32) -> (i32, i32, i32) {
    %c0_i32 = arith.constant 0 : i32
    %c0_i32_0 = arith.constant 0 : i32
    return %arg0, %c0_i32, %arg1 : i32, i32, i32
  }
  func.func @transform_1(%arg0: i32, %arg1: i32) -> (i32, i32) {
    %c0_i32 = arith.constant 0 : i32
    %c0_i32_0 = arith.constant 0 : i32
    %c0_i32_1 = arith.constant 0 : i32
    return %c0_i32, %c0_i32_0 : i32, i32
  }
  func.func @transform_2(%arg0: i32, %arg1: i32) -> (i32, i32, i32) {
    %c0_i32 = arith.constant 0 : i32
    %c0_i32_0 = arith.constant 0 : i32
    %c0_i32_1 = arith.constant 0 : i32
    return %arg0, %c0_i32, %c0_i32_0 : i32, i32, i32
  }
  func.func @transform_3(%arg0: i32, %arg1: i32) -> (i32, i32, i32) {
    %c0_i32 = arith.constant 0 : i32
    %c0_i32_0 = arith.constant 0 : i32
    return %arg0, %c0_i32, %arg1 : i32, i32, i32
  }
}

</mosaic_0001>

<bundles_post_ra>
// kernel: scse.1
= control target key start
LH: loop header
LB: loop body
LE: loop exit
PB: predicated region body
PF: predicated region fallthrough
CT: control target
= control target key end

     0   :  { %s545_s12 = smov 0   ;;  %s547_s13 = smov 0   ;;  %s609_s0 = inlined_call_operand.vmem [shape: f32[2,32,256], index: 0, kind: input, shape index: {}]   ;;  %s610_s1 = inlined_call_operand.vmem [shape: f32[32,1], index: 1, kind: input, shape index: {}]   ;;  %s611_s2 = inlined_call_operand.vmem [shape: f32[2,32,1], index: 2, kind: input, shape index: {}]   ;;  %s612_s3 = inlined_call_operand.vmem [shape: f32[2,32,256], index: 3, kind: output, shape index: {}]  }
   0x1   :  { %s549_s14 = smov 0  }
   0x2 LB: > { %s25_s15 = sadd.s32 1, %s518_s13  ;;  %p451_p0 = scmp.ge.s32.totalorder %s522_s14, 1  ;;  %s522_s14 = sphi %s549_s14, %s13_s14   ;;  %s518_s13 = sphi %s547_s13, %s614_s13   ;;  %s514_s12 = sphi %s545_s12, %s613_s12  }
   0x3   : > { %p27_p1 = scmp.ge.s32.totalorder %s25_s15, 2  ;;  %p168_p2 = scmp.lt.s32.totalorder %s522_s14, 3 }
   0x5   : > { %s616_s15 = smov (%p27_p1, %s25_s15), 0  ;;  %p169_p3 = pnand %p451_p0, %p168_p2 }
   0x6   : > { %v240_v0 = vld [vmem:[%s610_s1 + $0x10] sm:$0xff] (!%p169_p3)  ;;  %v238_v1 = vld [vmem:[%s610_s1] sm:$0xff] (!%p169_p3)  ;;  %p206_p4 = scmp.lt.s32.totalorder (!%p169_p3), %s514_s12, 1  ;;  %v524_v2 = vmov (!%p169_p3), 0   ;;  %v241_v3 = vld [vmem:[%s610_s1 + $0x18] sm:$0xff] (!%p169_p3) }
   0x7   : > { %172 = sbr.rel (%p169_p3) target bundleno = 194 (0xc2), region = 32  ;;  %491 = vset.pattern.permute.xlu1 (!%p169_p3), %v524_v2  ;;  %490 = vset.pattern.permute.xlu0 (!%p169_p3), %v524_v2  ;;  %v239_v4 = vld [vmem:[%s610_s1 + $0x8] sm:$0xff] (!%p169_p3) }
   0x8   : > { %254 = vperm.xlu1 (!%p169_p3), %491, %v240_v0   ;;  %244 = vperm.xlu0 (!%p169_p3), %490, %v238_v1  }
   0xc   : > { %259 = vperm.xlu1 (!%p169_p3), %491, %v241_v3   ;;  %249 = vperm.xlu0 (!%p169_p3), %490, %v239_v4  }
   0xe   : > { %s618_s12 = smov (!%p206_p4, %s514_s12), 1 }
   0xf   : > { %s463_s24 = sshll.u32 %s618_s12, 5  ;;  %s462_s28 = sshll.u32 %s618_s12, 6 }
  0x10   : > { %s219_s27 = scalar_lea.vmem %s611_s2, %s463_s24  ;;  %s213_s4 = scalar_lea.vmem %s609_s0, %s462_s28 }
  0x11   : > { %v301_v5 = vld [vmem:[%s219_s27 + $0x8] sm:$0xff]  ;;  %v300_v6 = vld [vmem:[%s219_s27] sm:$0xff]  ;;  %v303_v7 = vld [vmem:[%s219_s27 + $0x18] sm:$0xff]  ;;  %s228_s7 = scalar_lea.vmem %s612_s3, %s462_s28 }
  0x12   : > { %311 = vperm.xlu1 %491, %v301_v5   ;;  %306 = vperm.xlu0 %490, %v300_v6   ;;  %v302_v8 = vld [vmem:[%s219_s27 + $0x10] sm:$0xff]  ;;  %v230_v11 = vld [vmem:[%s213_s4] sm:$0xff]  ;;  %v587_v12 = vld [vmem:[%s213_s4 + $0x8] sm:$0xff] }
  0x13   : > { %v232_v13 = vld [vmem:[%s213_s4 + $0x10] sm:$0xff]  ;;  %v233_v14 = vld [vmem:[%s213_s4 + $0x18] sm:$0xff]  ;;  %v234_v15 = vld [vmem:[%s213_s4 + $0x20] sm:$0xff] }
  0x14   : > { %v589_v16 = vld [vmem:[%s213_s4 + $0x28] sm:$0xff]  ;;  %v236_v23 = vld [vmem:[%s213_s4 + $0x30] sm:$0xff]  ;;  %v237_v24 = vld [vmem:[%s213_s4 + $0x38] sm:$0xff] }
  0x16   : > { %321 = vperm.xlu1 %491, %v303_v7   ;;  %316 = vperm.xlu0 %490, %v302_v8  }
  0x87   : > { %v255_v9 = vpop.permute.xlu1 %254  ;;  %v245_v10 = vpop.permute.xlu0 %244 }
  0x88   : > { %v262_v18 = vmul.f32 %v245_v10, %v230_v11  ;;  %v263_v19 = vmul.f32 %v245_v10, %v587_v12  ;;  %v266_v25 = vmul.f32 %v255_v9, %v234_v15  ;;  %v267_v26 = vmul.f32 %v255_v9, %v589_v16 }
  0x8b   : > { %v250_v17 = vpop.permute.xlu0 %249  ;;  %v260_v22 = vpop.permute.xlu1 %259 }
  0x8c   : > { %v264_v20 = vmul.f32 %v250_v17, %v232_v13  ;;  %v265_v21 = vmul.f32 %v250_v17, %v233_v14  ;;  %v268_v29 = vmul.f32 %v260_v22, %v236_v23  ;;  %v269_v30 = vmul.f32 %v260_v22, %v237_v24 }
  0x8e   : > { %v270_v27 = vadd.f32 %v264_v20, %v262_v18  ;;  %v279_v28 = vadd.f32 %v265_v21, %v263_v19 }
  0x90   : > { %v271_v31 = vadd.f32 %v270_v27, %v266_v25  ;;  %v280_v32 = vadd.f32 %v279_v28, %v267_v26 }
  0x91   : > { %v312_v53 = vpop.permute.xlu1 %311  ;;  %v307_v54 = vpop.permute.xlu0 %306 }
  0x92   : > { %v272_v33 = vadd.f32 %v271_v31, %v268_v29  ;;  %v281_v34 = vadd.f32 %v280_v32, %v269_v30 }
  0x94   : > { %v273_v35 = vrot.slane %v272_v33, 4  ;;  %v282_v36 = vrot.slane %v281_v34, 4 }
  0x95   : > { %v322_v56 = vpop.permute.xlu1 %321  ;;  %v317_v57 = vpop.permute.xlu0 %316 }
  0x96   : > { %v274_v37 = vadd.f32 %v273_v35, %v272_v33  ;;  %v283_v38 = vadd.f32 %v282_v36, %v281_v34 }
  0x98   : > { %v275_v39 = vrot.slane %v274_v37, 2  ;;  %v284_v40 = vrot.slane %v283_v38, 2 }
  0x9a   : > { %v276_v41 = vadd.f32 %v275_v39, %v274_v37  ;;  %v285_v42 = vadd.f32 %v284_v40, %v283_v38 }
  0x9c   : > { %v277_v43 = vrot.slane %v276_v41, 1  ;;  %v286_v44 = vrot.slane %v285_v42, 1 }
  0x9e   : > { %v278_v45 = vadd.f32 %v277_v43, %v276_v41  ;;  %v287_v46 = vadd.f32 %v286_v44, %v285_v42 }
  0xa0   : > { %v458_v47 = vmul.f32 -1.442695, %v278_v45  ;;  %v459_v48 = vmul.f32 -1.442695, %v287_v46 }
  0xa2   : > { %492 = vpow2.f32 %v458_v47 }
  0xa3   : > { %494 = vpow2.f32 %v459_v48 }
  0xac   : > { %v493_v49 = vpop.eup %492 }
  0xad   : > { %v495_v50 = vpop.eup %494  ;;  %v294_v51 = vadd.f32 1.0, %v493_v49 }
  0xae   : > { %v295_v52 = vadd.f32 1.0, %v495_v50 }
  0xaf   : > { %496 = vrcp.f32 %v294_v51 }
  0xb0   : > { %498 = vrcp.f32 %v295_v52 }
  0xb9   : > { %v497_v55 = vpop.eup %496 }
  0xba   : > { %v499_v58 = vpop.eup %498  ;;  %v326_v59 = vadd.f32 %v497_v55, %v312_v53  ;;  %v324_v60 = vadd.f32 %v497_v55, %v307_v54  ;;  %v330_v61 = vadd.f32 %v497_v55, %v322_v56  ;;  %v328_v62 = vadd.f32 %v497_v55, %v317_v57 }
  0xbb   : > { %v327_v63 = vadd.f32 %v499_v58, %v312_v53  ;;  %v325_v0 = vadd.f32 %v499_v58, %v307_v54  ;;  %v331_v1 = vadd.f32 %v499_v58, %v322_v56  ;;  %v329_v2 = vadd.f32 %v499_v58, %v317_v57 }
  0xbc   : > { %v334_v3 = vmul.f32 %v326_v59, %v232_v13  ;;  %v332_v4 = vmul.f32 %v324_v60, %v230_v11  ;;  %v338_v5 = vmul.f32 %v330_v61, %v236_v23  ;;  %v336_v6 = vmul.f32 %v328_v62, %v234_v15 }
  0xbd   : > { %v335_v7 = vmul.f32 %v327_v63, %v233_v14  ;;  %v333_v8 = vmul.f32 %v325_v0, %v587_v12  ;;  %v339_v9 = vmul.f32 %v331_v1, %v237_v24  ;;  %v337_v10 = vmul.f32 %v329_v2, %v589_v16 }
  0xbe   : > { %342 = vst [vmem:[%s228_s7 + $0x10] sm:$0xff] %v334_v3  ;;  %340 = vst [vmem:[%s228_s7] sm:$0xff] %v332_v4 }
  0xbf   : > { %346 = vst [vmem:[%s228_s7 + $0x30] sm:$0xff] %v338_v5  ;;  %344 = vst [vmem:[%s228_s7 + $0x20] sm:$0xff] %v336_v6 }
  0xc0   : > { %343 = vst [vmem:[%s228_s7 + $0x18] sm:$0xff] %v335_v7  ;;  %341 = vst [vmem:[%s228_s7 + $0x8] sm:$0xff] %v333_v8 }
  0xc1   : > { %347 = vst [vmem:[%s228_s7 + $0x38] sm:$0xff] %v339_v9  ;;  %345 = vst [vmem:[%s228_s7 + $0x28] sm:$0xff] %v337_v10 }
  0xc2 PF: > { %s13_s14 = sadd.s32 1, %s522_s14   ;;  %s613_s12 = smov %s518_s13 }
  0xc3   : > { %p10_p5 = scmp.ge.s32.totalorder %s13_s14, 4   ;;  %s614_s13 = smov %s616_s15 }
  0xc5   :  { %12 = sbr.rel (!%p10_p5) target bundleno = 2 (0x2), region = 65 }

</bundles_post_ra>
